<compile_context>
chip_gen: v6e
topology: v6e:2x2x1
jax: 0.10.0
libtpu: 0.0.40
codegen_flags: <defaults>
</compile_context>

<pallas_src>
import jax
import jax.numpy as jnp
from jax import lax
from jax.experimental import pallas as pl
from jax.experimental.pallas import tpu as pltpu

N, CIN, H, W = 2, 4, 16, 16       # batch, input_nc(=outer_nc), spatial
CMID = 8                          # inner_nc
COUT = 4                          # outer_nc
H2, W2 = H // 2, W // 2
NP2 = N * H2 * W2                 # 128 pooled pixels -> TPU lane dim
NPHASE = 4                        # 2x2 pool offsets == 2x2 transposed-conv output phases
K9 = CIN * 9
EPS = 1e-5
SLOPE = 0.2
CNT = float(NPHASE * NP2)         # = N*H*W elements per BN channel


def _leaky(x):
    return jnp.where(x > 0, x, SLOPE * x)


def unet_inner_kernel(p_ref, wd_ref, wut_ref, gamma_ref, beta_ref, y_ref):
    """Hot path of the innermost UNet block.

    p_ref    : (K9=36, 4*NP2=512) im2col patches, the 4 pool phases concatenated along lanes
    wd_ref   : (CMID=8, 36)       Conv2d(CIN->CMID, k=3, s=1, p=1, bias=False) weight (flat)
    wut_ref  : (16, CMID=8)       ConvTranspose2d(CMID->COUT, k=2, s=2) weight,
                                  rows ordered k-major: row = (ky*2+kx)*COUT + co
    gamma_ref, beta_ref : (COUT, 1)  BatchNorm2d affine parameters
    y_ref    : (16, NP2=128)      normalized up-conv output, same k-major row order
    """
    # down: LeakyReLU(0.2) -> 3x3 conv as ONE matmul covering all 4 pool offsets
    a = _leaky(p_ref[...])                                             # (36, 512)
    c = jnp.dot(wd_ref[...], a, preferred_element_type=jnp.float32)    # (8, 512)

    # MaxPool2d(2): elementwise max across the four 128-lane phase slices (vreg-exact)
    pooled = jnp.maximum(jnp.maximum(c[:, 0:NP2], c[:, NP2:2 * NP2]),
                         jnp.maximum(c[:, 2 * NP2:3 * NP2], c[:, 3 * NP2:4 * NP2]))

    # up: LeakyReLU(0.2) -> ConvTranspose2d(k=2, s=2) as ONE matmul over all 4 output phases
    u = _leaky(pooled)                                                 # (8, 128)
    ups = jnp.dot(wut_ref[...], u, preferred_element_type=jnp.float32)  # (16, 128)

    # BatchNorm2d(COUT), training-mode batch stats, single pass (sum + sum of squares)
    s_row = jnp.sum(ups, axis=1, keepdims=True)                        # (16, 1)
    s2_row = jnp.sum(ups * ups, axis=1, keepdims=True)                 # (16, 1)
    # rows are k-major (row = k*COUT + co): per-channel totals = sum of the 4 phase chunks
    s_ch = (s_row[0:COUT] + s_row[COUT:2 * COUT]
            + s_row[2 * COUT:3 * COUT] + s_row[3 * COUT:4 * COUT])     # (4, 1)
    s2_ch = (s2_row[0:COUT] + s2_row[COUT:2 * COUT]
             + s2_row[2 * COUT:3 * COUT] + s2_row[3 * COUT:4 * COUT])  # (4, 1)
    mean = s_ch * (1.0 / CNT)
    var = s2_ch * (1.0 / CNT) - mean * mean                            # biased variance
    scale = gamma_ref[...] * lax.rsqrt(var + EPS)                      # (4, 1)
    shift = beta_ref[...] - mean * scale                               # (4, 1)
    scale16 = jnp.concatenate([scale, scale, scale, scale], axis=0)    # (16, 1), row -> row%4
    shift16 = jnp.concatenate([shift, shift, shift, shift], axis=0)

    # single dense store: two full 8x128 vregs, no masked vst
    y_ref[...] = ups * scale16 + shift16


@jax.jit
def unet_block_forward(x, wd, wu, gamma, beta):
    # im2col via one XLA op; feature ordering is channel-major (ci, dy, dx), which matches
    # wd.reshape(CMID, CIN*9).  Padding zeros commute with LeakyReLU (LeakyReLU(0)=0), so
    # the activation is applied in-kernel on the patch slab.
    patches = lax.conv_general_dilated_patches(
        x, filter_shape=(3, 3), window_strides=(1, 1), padding=((1, 1), (1, 1)),
        dimension_numbers=('NCHW', 'OIHW', 'NCHW'))                    # (N, 36, H, W)
    # regroup so the 4 maxpool phases are concatenated along lanes: (36, 4*128)
    p = patches.reshape(N, K9, H2, 2, W2, 2)                           # (n, k9, i, qy, j, qx)
    p = p.transpose(1, 3, 5, 0, 2, 4).reshape(K9, NPHASE * NP2)

    wd_flat = wd.reshape(CMID, K9)                                     # (8, 36)
    # ConvTranspose2d weight (CMID, COUT, 2, 2) -> (16, 8), row = (ky*2+kx)*COUT + co
    wut16 = wu.transpose(2, 3, 1, 0).reshape(NPHASE * COUT, CMID)

    cost = pl.CostEstimate(
        flops=2 * (CMID * K9 * NPHASE * NP2 + NPHASE * COUT * CMID * NP2),
        transcendentals=COUT,
        bytes_accessed=4 * (K9 * NPHASE * NP2 + CMID * K9
                            + NPHASE * COUT * CMID + 2 * COUT + NPHASE * COUT * NP2))

    # Single ungridded invocation: problem is tiny (<0.1 MiB in VMEM).  If batched over many
    # images, add a leading grid axis with dimension_semantics=("parallel",) to use both
    # TensorCores on v7x; bf16 matmul inputs are a further option on v6e/v7x.
    y_phases = pl.pallas_call(
        unet_inner_kernel,
        out_shape=jax.ShapeDtypeStruct((NPHASE * COUT, NP2), jnp.float32),
        in_specs=[pl.BlockSpec(memory_space=pltpu.MemorySpace.VMEM)] * 5,
        out_specs=pl.BlockSpec(memory_space=pltpu.MemorySpace.VMEM),
        cost_estimate=cost,
    )(p, wd_flat, wut16, gamma.reshape(COUT, 1), beta.reshape(COUT, 1))

    # de-interleave the 4 output phases back to (N, COUT, H, W): y[n,c,2i+ky,2j+kx]
    y = y_phases.reshape(2, 2, COUT, N, H2, W2)                        # (ky, kx, co, n, i, j)
    y = y.transpose(3, 2, 4, 0, 5, 1).reshape(N, COUT, H, W)
    # TODO(synk): folding the skip-concat + de-interleave into the kernel epilogue would need
    # strided NCHW stores (masked vst); kept as a single XLA transpose + concat instead.
    return jnp.concatenate([x, y], axis=1)


def reference_forward(x, wd, wu, gamma, beta):
    """Pure-JAX reference of the PyTorch module (NCHW)."""
    a = jnp.where(x > 0, x, SLOPE * x)
    conv = lax.conv_general_dilated(a, wd, (1, 1), ((1, 1), (1, 1)),
                                    dimension_numbers=('NCHW', 'OIHW', 'NCHW'),
                                    precision=lax.Precision.HIGHEST)
    pooled = conv.reshape(N, CMID, H2, 2, W2, 2).max(axis=(3, 5))
    u = jnp.where(pooled > 0, pooled, SLOPE * pooled)
    up = jnp.einsum('ncij,cokl->noikjl', u, wu,
                    precision=lax.Precision.HIGHEST).reshape(N, COUT, H, W)
    mean = up.mean(axis=(0, 2, 3), keepdims=True)
    var = up.var(axis=(0, 2, 3), keepdims=True)              # biased, training-mode BN
    y = gamma[None, :, None, None] * (up - mean) / jnp.sqrt(var + EPS) + beta[None, :, None, None]
    return jnp.concatenate([x, y], axis=1)


if __name__ == "__main__":
    key = jax.random.PRNGKey(0)
    kx, kd, ku = jax.random.split(key, 3)
    x = jax.random.normal(kx, (N, CIN, H, W), jnp.float32)
    # Conv2d(4->8, k=3, bias=False) and ConvTranspose2d(8->4, k=2, s=2, bias=False) weights
    wd = jax.random.normal(kd, (CMID, CIN, 3, 3), jnp.float32) * 0.2
    wu = jax.random.normal(ku, (CMID, COUT, 2, 2), jnp.float32) * 0.2
    # BatchNorm2d affine params (deterministic, slightly non-trivial)
    gamma = 1.0 + 0.1 * jnp.arange(COUT, dtype=jnp.float32)
    beta = 0.05 * jnp.arange(COUT, dtype=jnp.float32)

    out = jax.block_until_ready(unet_block_forward(x, wd, wu, gamma, beta))
    ref = reference_forward(x, wd, wu, gamma, beta)

    assert out.shape == (N, CIN + COUT, H, W), out.shape
    assert jnp.allclose(out, ref, rtol=2e-2, atol=2e-2), float(jnp.max(jnp.abs(out - ref)))
    # TODO(synk): BatchNorm2d running_mean/running_var buffer updates (training-time side
    # effect) are not modeled; only the forward normalization with batch stats is computed.
    print("KERNEL_OK")
</pallas_src>

<mosaic_0001>
module attributes {stable_mosaic.version = 11 : i64} {
  func.func @unet_inner_kernel(%arg0: memref<36x512xf32, #tpu.memory_space<vmem>>, %arg1: memref<8x36xf32, #tpu.memory_space<vmem>>, %arg2: memref<16x8xf32, #tpu.memory_space<vmem>>, %arg3: memref<4x1xf32, #tpu.memory_space<vmem>>, %arg4: memref<4x1xf32, #tpu.memory_space<vmem>>, %arg5: memref<16x128xf32, #tpu.memory_space<vmem>>) attributes {dimension_semantics = [], scalar_prefetch = 0 : i64, scratch_operands = 0 : i64, tpu.core_type = #tpu.core_type<tc>} {
    %c0 = arith.constant 0 : index
    %c0_0 = arith.constant 0 : index
    %0 = vector.load %arg0[%c0, %c0_0] : memref<36x512xf32, #tpu.memory_space<vmem>>, vector<36x512xf32>
    %cst = arith.constant 0.000000e+00 : f32
    %1 = vector.broadcast %cst : f32 to vector<36x512xf32>
    %2 = arith.cmpf ogt, %0, %1 : vector<36x512xf32>
    %cst_1 = arith.constant 2.000000e-01 : f32
    %3 = vector.broadcast %cst_1 : f32 to vector<36x512xf32>
    %4 = arith.mulf %3, %0 : vector<36x512xf32>
    %5 = arith.select %2, %0, %4 : vector<36x512xi1>, vector<36x512xf32>
    %c0_2 = arith.constant 0 : index
    %c0_3 = arith.constant 0 : index
    %6 = vector.load %arg1[%c0_2, %c0_3] : memref<8x36xf32, #tpu.memory_space<vmem>>, vector<8x36xf32>
    %cst_4 = arith.constant dense<0.000000e+00> : vector<8x512xf32>
    %7 = tpu.matmul %6, %5, %cst_4 {dimension_numbers = #tpu.dot_dimension_numbers<[1], [0], [0], [1], [0, 0, 1, 1], [], []>} : vector<8x36xf32>, vector<36x512xf32>, vector<8x512xf32> -> vector<8x512xf32>
    %8 = vector.extract_strided_slice %7 {offsets = [0, 0], sizes = [8, 128], strides = [1, 1]} : vector<8x512xf32> to vector<8x128xf32>
    %9 = vector.extract_strided_slice %7 {offsets = [0, 128], sizes = [8, 128], strides = [1, 1]} : vector<8x512xf32> to vector<8x128xf32>
    %10 = arith.maximumf %8, %9 : vector<8x128xf32>
    %11 = vector.extract_strided_slice %7 {offsets = [0, 256], sizes = [8, 128], strides = [1, 1]} : vector<8x512xf32> to vector<8x128xf32>
    %12 = vector.extract_strided_slice %7 {offsets = [0, 384], sizes = [8, 128], strides = [1, 1]} : vector<8x512xf32> to vector<8x128xf32>
    %13 = arith.maximumf %11, %12 : vector<8x128xf32>
    %14 = arith.maximumf %10, %13 : vector<8x128xf32>
    %cst_5 = arith.constant 0.000000e+00 : f32
    %15 = vector.broadcast %cst_5 : f32 to vector<8x128xf32>
    %16 = arith.cmpf ogt, %14, %15 : vector<8x128xf32>
    %cst_6 = arith.constant 2.000000e-01 : f32
    %17 = vector.broadcast %cst_6 : f32 to vector<8x128xf32>
    %18 = arith.mulf %17, %14 : vector<8x128xf32>
    %19 = arith.select %16, %14, %18 : vector<8x128xi1>, vector<8x128xf32>
    %c0_7 = arith.constant 0 : index
    %c0_8 = arith.constant 0 : index
    %20 = vector.load %arg2[%c0_7, %c0_8] : memref<16x8xf32, #tpu.memory_space<vmem>>, vector<16x8xf32>
    %cst_9 = arith.constant dense<0.000000e+00> : vector<16x128xf32>
    %21 = tpu.matmul %20, %19, %cst_9 {dimension_numbers = #tpu.dot_dimension_numbers<[1], [0], [0], [1], [0, 0, 1, 1], [], []>} : vector<16x8xf32>, vector<8x128xf32>, vector<16x128xf32> -> vector<16x128xf32>
    %cst_10 = arith.constant dense<0.000000e+00> : vector<16xf32>
    %22 = vector.multi_reduction <add>, %21, %cst_10 [1] : vector<16x128xf32> to vector<16xf32>
    %23 = vector.shape_cast %22 : vector<16xf32> to vector<16x1xf32>
    %24 = arith.mulf %21, %21 : vector<16x128xf32>
    %cst_11 = arith.constant dense<0.000000e+00> : vector<16xf32>
    %25 = vector.multi_reduction <add>, %24, %cst_11 [1] : vector<16x128xf32> to vector<16xf32>
    %26 = vector.shape_cast %25 : vector<16xf32> to vector<16x1xf32>
    %27 = vector.extract_strided_slice %23 {offsets = [0, 0], sizes = [4, 1], strides = [1, 1]} : vector<16x1xf32> to vector<4x1xf32>
    %28 = vector.extract_strided_slice %23 {offsets = [4, 0], sizes = [4, 1], strides = [1, 1]} : vector<16x1xf32> to vector<4x1xf32>
    %29 = arith.addf %27, %28 : vector<4x1xf32>
    %30 = vector.extract_strided_slice %23 {offsets = [8, 0], sizes = [4, 1], strides = [1, 1]} : vector<16x1xf32> to vector<4x1xf32>
    %31 = arith.addf %29, %30 : vector<4x1xf32>
    %32 = vector.extract_strided_slice %23 {offsets = [12, 0], sizes = [4, 1], strides = [1, 1]} : vector<16x1xf32> to vector<4x1xf32>
    %33 = arith.addf %31, %32 : vector<4x1xf32>
    %34 = vector.extract_strided_slice %26 {offsets = [0, 0], sizes = [4, 1], strides = [1, 1]} : vector<16x1xf32> to vector<4x1xf32>
    %35 = vector.extract_strided_slice %26 {offsets = [4, 0], sizes = [4, 1], strides = [1, 1]} : vector<16x1xf32> to vector<4x1xf32>
    %36 = arith.addf %34, %35 : vector<4x1xf32>
    %37 = vector.extract_strided_slice %26 {offsets = [8, 0], sizes = [4, 1], strides = [1, 1]} : vector<16x1xf32> to vector<4x1xf32>
    %38 = arith.addf %36, %37 : vector<4x1xf32>
    %39 = vector.extract_strided_slice %26 {offsets = [12, 0], sizes = [4, 1], strides = [1, 1]} : vector<16x1xf32> to vector<4x1xf32>
    %40 = arith.addf %38, %39 : vector<4x1xf32>
    %cst_12 = arith.constant 0.001953125 : f32
    %41 = vector.broadcast %cst_12 : f32 to vector<4x1xf32>
    %42 = arith.mulf %33, %41 : vector<4x1xf32>
    %cst_13 = arith.constant 0.001953125 : f32
    %43 = vector.broadcast %cst_13 : f32 to vector<4x1xf32>
    %44 = arith.mulf %40, %43 : vector<4x1xf32>
    %45 = arith.mulf %42, %42 : vector<4x1xf32>
    %46 = arith.subf %44, %45 : vector<4x1xf32>
    %c0_14 = arith.constant 0 : index
    %c0_15 = arith.constant 0 : index
    %47 = vector.load %arg3[%c0_14, %c0_15] : memref<4x1xf32, #tpu.memory_space<vmem>>, vector<4x1xf32>
    %cst_16 = arith.constant 9.99999974E-6 : f32
    %48 = vector.broadcast %cst_16 : f32 to vector<4x1xf32>
    %49 = arith.addf %46, %48 : vector<4x1xf32>
    %50 = math.rsqrt %49 : vector<4x1xf32>
    %51 = arith.mulf %47, %50 : vector<4x1xf32>
    %c0_17 = arith.constant 0 : index
    %c0_18 = arith.constant 0 : index
    %52 = vector.load %arg4[%c0_17, %c0_18] : memref<4x1xf32, #tpu.memory_space<vmem>>, vector<4x1xf32>
    %53 = arith.mulf %42, %51 : vector<4x1xf32>
    %54 = arith.subf %52, %53 : vector<4x1xf32>
    %55 = tpu.concatenate %51, %51, %51, %51 in 0 : vector<4x1xf32>, vector<4x1xf32>, vector<4x1xf32>, vector<4x1xf32> -> vector<16x1xf32>
    %56 = tpu.concatenate %54, %54, %54, %54 in 0 : vector<4x1xf32>, vector<4x1xf32>, vector<4x1xf32>, vector<4x1xf32> -> vector<16x1xf32>
    %57 = vector.broadcast %55 : vector<16x1xf32> to vector<16x128xf32>
    %58 = arith.mulf %21, %57 : vector<16x128xf32>
    %59 = vector.broadcast %56 : vector<16x1xf32> to vector<16x128xf32>
    %60 = arith.addf %58, %59 : vector<16x128xf32>
    %c0_19 = arith.constant 0 : index
    %c0_20 = arith.constant 0 : index
    %61 = vector.load %arg5[%c0_19, %c0_20] : memref<16x128xf32, #tpu.memory_space<vmem>>, vector<16x128xf32>
    tpu.vector_store %arg5[%c0_19, %c0_20], %60 {strides = array<i32>} : memref<16x128xf32, #tpu.memory_space<vmem>>, vector<16x128xf32>,
    return
  }
}

</mosaic_0001>

<bundles_post_ra>
// kernel: unet_block_forward.1
= control target key start
LH: loop header
LB: loop body
LE: loop exit
PB: predicated region body
PF: predicated region fallthrough
CT: control target
= control target key end

     0   :  { %vm105_vm0 = vcmask 1043456   ;;  %v439_v3 = vmov 0.0   ;;  %s563_s0 = inlined_call_operand.vmem [shape: f32[36,512], index: 0, kind: input, shape index: {}]   ;;  %s564_s1 = inlined_call_operand.vmem [shape: f32[8,36], index: 1, kind: input, shape index: {}]   ;;  %s565_s2 = inlined_call_operand.vmem [shape: f32[16,8], index: 2, kind: input, shape index: {}]   ;;  %s566_s3 = inlined_call_operand.vmem [shape: f32[4,1], index: 3, kind: input, shape index: {}]   ;;  %s567_s4 = inlined_call_operand.vmem [shape: f32[4,1], index: 4, kind: input, shape index: {}]   ;;  %s568_s5 = inlined_call_operand.vmem [shape: f32[16,128], index: 5, kind: output, shape index: {}]  }
   0x1   :  { %v37_v0 = vld [vmem:[%s563_s0 + $0x88] sm:$0xf]  ;;  %v39_v1 = vld [vmem:[%s563_s0 + $0x98] sm:$0xf]  ;;  %v36_v2 = vld [vmem:[%s563_s0 + $0x80] sm:$0xf]  ;;  %182 = vmatprep.mubr.f32.mxu0 %v439_v3  ;;  %253 = vmatprep.mubr.f32.mxu1 %v439_v3 }
   0x2   :  { %vm57_vm1 = vcmp.gt.f32.partialorder %v37_v0, 0.0  ;;  %v77_v4 = vmul.f32 0.2, %v37_v0  ;;  %vm59_vm2 = vcmp.gt.f32.partialorder %v39_v1, 0.0  ;;  %v79_v5 = vmul.f32 0.2, %v39_v1 }
   0x3   :  { %vm56_vm3 = vcmp.gt.f32.partialorder %v36_v2, 0.0  ;;  %v76_v6 = vmul.f32 0.2, %v36_v2  ;;  %v38_v7 = vld [vmem:[%s563_s0 + $0x90] sm:$0xf]  ;;  %v33_v8 = vld [vmem:[%s563_s0 + $0x68] sm:$0xff] }
   0x4   :  { %v97_v9 = vsel %vm57_vm1, %v37_v0, %v77_v4  ;;  %v99_v10 = vsel %vm59_vm2, %v39_v1, %v79_v5  ;;  %vm58_vm4 = vcmp.gt.f32.partialorder %v38_v7, 0.0  ;;  %v78_v11 = vmul.f32 0.2, %v38_v7  ;;  %v35_v12 = vld [vmem:[%s563_s0 + $0x78] sm:$0xff]  ;;  %v32_v13 = vld [vmem:[%s563_s0 + $0x60] sm:$0xff]  ;;  %v34_v14 = vld [vmem:[%s563_s0 + $0x70] sm:$0xff] }
   0x5   :  { %417 = vmatprep.subr.msk.mxu0 %vm105_vm0, %v97_v9  ;;  %420 = vmatprep.subr.msk.mxu1 %vm105_vm0, %v99_v10  ;;  %v96_v15 = vsel %vm56_vm3, %v36_v2, %v76_v6  ;;  %vm53_vm5 = vcmp.gt.f32.partialorder %v33_v8, 0.0  ;;  %v73_v16 = vmul.f32 0.2, %v33_v8  ;;  %vm55_vm6 = vcmp.gt.f32.partialorder %v35_v12, 0.0  ;;  %v29_v17 = vld [vmem:[%s563_s0 + $0x48] sm:$0xff]  ;;  %v31_v18 = vld [vmem:[%s563_s0 + $0x58] sm:$0xff] }
   0x6   :  { %418 = vmatpush1.msk.msra.mxu0 %vm105_vm0, %v96_v15  ;;  %v98_v19 = vsel %vm58_vm4, %v38_v7, %v78_v11  ;;  %v75_v20 = vmul.f32 0.2, %v35_v12  ;;  %vm52_vm7 = vcmp.gt.f32.partialorder %v32_v13, 0.0  ;;  %v72_v21 = vmul.f32 0.2, %v32_v13  ;;  %v28_v22 = vld [vmem:[%s563_s0 + $0x40] sm:$0xff] }
   0x7   :  { %421 = vmatpush1.msk.msra.mxu1 %vm105_vm0, %v98_v19  ;;  %v93_v23 = vsel %vm53_vm5, %v33_v8, %v73_v16  ;;  %vm54_vm8 = vcmp.gt.f32.partialorder %v34_v14, 0.0  ;;  %v74_v24 = vmul.f32 0.2, %v34_v14  ;;  %vm49_vm9 = vcmp.gt.f32.partialorder %v29_v17, 0.0  ;;  %v30_v25 = vld [vmem:[%s563_s0 + $0x50] sm:$0xff]  ;;  %v25_v26 = vld [vmem:[%s563_s0 + $0x28] sm:$0xff] }
   0x8   :  { %142 = vmatprep.subr.mxu0 %v93_v23  ;;  %v95_v27 = vsel %vm55_vm6, %v35_v12, %v75_v20  ;;  %v92_v28 = vsel %vm52_vm7, %v32_v13, %v72_v21  ;;  %v69_v29 = vmul.f32 0.2, %v29_v17  ;;  %vm51_vm10 = vcmp.gt.f32.partialorder %v31_v18, 0.0  ;;  %v27_v30 = vld [vmem:[%s563_s0 + $0x38] sm:$0xff]  ;;  %v24_v34 = vld [vmem:[%s563_s0 + $0x20] sm:$0xff]  ;;  %v26_v37 = vld [vmem:[%s563_s0 + $0x30] sm:$0xff] }
   0x9   :  { %213 = vmatprep.subr.mxu1 %v95_v27  ;;  %143 = vmatpush1.msra.mxu0 %v92_v28  ;;  %v94_v31 = vsel %vm54_vm8, %v34_v14, %v74_v24  ;;  %v71_v32 = vmul.f32 0.2, %v31_v18  ;;  %vm48_vm11 = vcmp.gt.f32.partialorder %v28_v22, 0.0  ;;  %v68_v33 = vmul.f32 0.2, %v28_v22  ;;  %v21_v38 = vld [vmem:[%s563_s0 + $0x8] sm:$0xff] }
   0xa   :  { %214 = vmatpush1.msra.mxu1 %v94_v31  ;;  %v89_v35 = vsel %vm49_vm9, %v29_v17, %v69_v29  ;;  %vm50_vm12 = vcmp.gt.f32.partialorder %v30_v25, 0.0  ;;  %v70_v36 = vmul.f32 0.2, %v30_v25  ;;  %vm45_vm13 = vcmp.gt.f32.partialorder %v25_v26, 0.0  ;;  %v23_v42 = vld [vmem:[%s563_s0 + $0x18] sm:$0xff]  ;;  %v20_v46 = vld [vmem:[%s563_s0] sm:$0xff] }
   0xb   :  { %144 = vmatprep.subr.mxu0 %v89_v35  ;;  %v91_v39 = vsel %vm51_vm10, %v31_v18, %v71_v32  ;;  %v88_v40 = vsel %vm48_vm11, %v28_v22, %v68_v33  ;;  %v65_v41 = vmul.f32 0.2, %v25_v26  ;;  %vm47_vm14 = vcmp.gt.f32.partialorder %v27_v30, 0.0  ;;  %v22_v49 = vld [vmem:[%s563_s0 + $0x10] sm:$0xff]  ;;  %v100_v58 = vld [vmem:[%s564_s1] sm:$0xff]  ;;  %v267_v8 = vld [vmem:[%s565_s2 + $0x8] sm:$0xff] }
   0xc   :  { %215 = vmatprep.subr.mxu1 %v91_v39  ;;  %145 = vmatpush1.msra.mxu0 %v88_v40  ;;  %v90_v43 = vsel %vm50_vm12, %v30_v25, %v70_v36  ;;  %v67_v44 = vmul.f32 0.2, %v27_v30  ;;  %vm44_vm15 = vcmp.gt.f32.partialorder %v24_v34, 0.0  ;;  %v64_v45 = vmul.f32 0.2, %v24_v34  ;;  %v266_v62 = vld [vmem:[%s565_s2] sm:$0xff] }
   0xd   :  { %216 = vmatpush1.msra.mxu1 %v90_v43  ;;  %v85_v47 = vsel %vm45_vm13, %v25_v26, %v65_v41  ;;  %vm46_vm1 = vcmp.gt.f32.partialorder %v26_v37, 0.0  ;;  %v66_v48 = vmul.f32 0.2, %v26_v37  ;;  %vm41_vm2 = vcmp.gt.f32.partialorder %v21_v38, 0.0  ;;  %v382_v33 = vld [vmem:[%s566_s3] sm:$0xf] }
   0xe   :  { %146 = vmatprep.subr.mxu0 %v85_v47  ;;  %v87_v50 = vsel %vm47_vm14, %v27_v30, %v67_v44  ;;  %v84_v51 = vsel %vm44_vm15, %v24_v34, %v64_v45  ;;  %v61_v52 = vmul.f32 0.2, %v21_v38  ;;  %vm43_vm3 = vcmp.gt.f32.partialorder %v23_v42, 0.0  ;;  %v386_v36 = vld [vmem:[%s567_s4] sm:$0xf] }
   0xf   :  { %217 = vmatprep.subr.mxu1 %v87_v50  ;;  %147 = vmatpush1.msra.mxu0 %v84_v51  ;;  %v86_v53 = vsel %vm46_vm1, %v26_v37, %v66_v48  ;;  %v63_v54 = vmul.f32 0.2, %v23_v42  ;;  %vm40_vm4 = vcmp.gt.f32.partialorder %v20_v46, 0.0  ;;  %v60_v55 = vmul.f32 0.2, %v20_v46 }
  0x10   :  { %218 = vmatpush1.msra.mxu1 %v86_v53  ;;  %v81_v56 = vsel %vm41_vm2, %v21_v38, %v61_v52  ;;  %vm42_vm5 = vcmp.gt.f32.partialorder %v22_v49, 0.0  ;;  %v62_v57 = vmul.f32 0.2, %v22_v49  ;;  %vm101_vm6 = vcmask 293888  }
  0x11   :  { %148 = vmatprep.subr.mxu0 %v81_v56  ;;  %v83_v59 = vsel %vm43_vm3, %v23_v42, %v63_v54  ;;  %v80_v60 = vsel %vm40_vm4, %v20_v46, %v60_v55  ;;  %vm268_vm7 = vcmask 64512   ;;  %v440_v13 = vmov 0  }
  0x12   :  { %219 = vmatprep.subr.mxu1 %v83_v59  ;;  %149 = vmatpush1.msra.mxu0 %v80_v60  ;;  %v82_v61 = vsel %vm42_vm5, %v22_v49, %v62_v57 }
  0x13   :  { %220 = vmatpush1.msra.mxu1 %v82_v61  ;;  %419 = vmatmul.mubr.msk.f32.vlgmr.msra.gmra.mxu0 %vm101_vm6, %v100_v58 }
  0x14   :  { %422 = vmatmul.mubr.msk.f32.vlgmr.msra.gmra.mxu1 %vm101_vm6, %v100_v58  ;;  %430 = vmatprep.mubr.msk.f32.mxu0 %vm268_vm7, %v266_v62 }
  0x15   :  { %435 = vset.pattern.permute.xlu0 %v440_v13  ;;  %436 = vset.pattern.permute.xlu1 %v440_v13 }
  0xd3   :  { %v184_v63 = vpop.f32.mrf.mxu0 }
  0xd4   :  { %v255_v0 = vpop.f32.mrf.mxu1 }
  0xd5   :  { %v186_v1 = vpop.f32.mrf.mxu0 }
  0xd6   :  { %v260_v2 = vmax.f32 %v184_v63, %v186_v1  ;;  %v257_v3 = vpop.f32.mrf.mxu1 }
  0xd7   :  { %v261_v4 = vmax.f32 %v255_v0, %v257_v3 }
  0xd9   :  { %v262_v5 = vmax.f32 %v260_v2, %v261_v4 }
  0xdb   :  { %vm263_vm8 = vcmp.gt.f32.partialorder %v262_v5, 0.0  ;;  %v264_v6 = vmul.f32 0.2, %v262_v5 }
  0xdd   :  { %v265_v7 = vsel %vm263_vm8, %v262_v5, %v264_v6 }
  0xde   :  { %428 = vmatprep.subr.mxu0 %v265_v7 }
  0xdf   :  { %429 = vmatpush3.msra.mxu0 %v265_v7 }
  0xe0   :  { %431 = vmatmul.mubr.msk.f32.vlgmr.msra.gmra.mxu0 %vm268_vm7, %v267_v8 }
 0x1a0   :  { %v432_v9 = vpop.f32.mrf.mxu0 }
 0x1a1   :  { %352 = vadd.xlane.f32.xlu1 %v432_v9  ;;  %v355_v11 = vmul.f32 %v432_v9, %v432_v9 }
 0x1a2   :  { %v341_v10 = vpop.f32.mrf.mxu0 }
 0x1a3   :  { %350 = vadd.xlane.f32.xlu0 %v341_v10  ;;  %v354_v12 = vmul.f32 %v341_v10, %v341_v10 }
 0x1a5   :  { %358 = vadd.xlane.f32.xlu1 %v355_v11 }
 0x1a7   :  { %356 = vadd.xlane.f32.xlu0 %v354_v12 }
 0x22a   :  { %v353_v14 = vpop.xlane.xlu1 %352 }
 0x22b   :  { %v366_v19 = vrot.slane %v353_v14, 4 }
 0x22c   :  { %v351_v15 = vpop.xlane.xlu0 %350 }
 0x22d   :  { %v361_v16 = vrot.slane %v351_v15, 4 }
 0x22e   :  { %v359_v22 = vpop.xlane.xlu1 %358 }
 0x22f   :  { %v363_v17 = vadd.f32 %v361_v16, %v351_v15  ;;  %v375_v26 = vrot.slane %v359_v22, 4 }
 0x230   :  { %v357_v18 = vpop.xlane.xlu0 %356 }
 0x231   :  { %v364_v20 = vadd.f32 %v363_v17, %v353_v14  ;;  %v370_v21 = vrot.slane %v357_v18, 4 }
 0x233   :  { %v368_v23 = vadd.f32 %v366_v19, %v364_v20  ;;  %v372_v24 = vadd.f32 %v370_v21, %v357_v18 }
 0x235   :  { %v378_v25 = vmul.f32 0.001953125, %v368_v23  ;;  %v373_v27 = vadd.f32 %v372_v24, %v359_v22 }
 0x237   :  { %v377_v28 = vadd.f32 %v375_v26, %v373_v27  ;;  %v380_v29 = vmul.f32 %v378_v25, %v378_v25 }
 0x239   :  { %v379_v30 = vmul.f32 0.001953125, %v377_v28 }
 0x23b   :  { %v381_v31 = vsub.f32 %v379_v30, %v380_v29 }
 0x23d   :  { %v383_v32 = vadd.f32 1e-05, %v381_v31 }
 0x23f   :  { %437 = vrsqrt.f32 %v383_v32 }
 0x24c   :  { %v438_v34 = vpop.eup %437 }
 0x24d   :  { %v385_v35 = vmul.f32 %v438_v34, %v382_v33 }
 0x24f   :  { %v390_v37 = vrot.slane %v385_v35, 4  ;;  %v387_v38 = vmul.f32 %v385_v35, %v378_v25 }
 0x251   :  { %v392_v39 = vsel %vm105_vm0, %v385_v35, %v390_v37  ;;  %v388_v40 = vsub.f32 %v386_v36, %v387_v38 }
 0x252   :  { %399 = vperm.xlu0 %435, %v392_v39  }
 0x253   :  { %v394_v41 = vrot.slane %v388_v40, 4 }
 0x255   :  { %v396_v42 = vsel %vm105_vm0, %v388_v40, %v394_v41 }
 0x256   :  { %406 = vperm.xlu1 %436, %v396_v42  }
 0x2cd   :  { %v400_v43 = vpop.permute.xlu0 %399 }
 0x2ce   :  { %v402_v44 = vmul.f32 %v400_v43, %v341_v10  ;;  %v403_v45 = vmul.f32 %v432_v9, %v400_v43 }
 0x2d1   :  { %v407_v46 = vpop.permute.xlu1 %406 }
 0x2d2   :  { %v409_v47 = vadd.f32 %v407_v46, %v402_v44  ;;  %v410_v48 = vadd.f32 %v407_v46, %v403_v45 }
 0x2d4   :  { %411 = vst [vmem:[%s568_s5] sm:$0xff] %v409_v47  ;;  %412 = vst [vmem:[%s568_s5 + $0x8] sm:$0xff] %v410_v48 }

</bundles_post_ra>
